<compile_context>
chip_gen: v6e
topology: v6e:2x2x1
jax: 0.10.0
libtpu: 0.0.40
codegen_flags: <defaults>
</compile_context>

<pallas_src>
import jax
import jax.numpy as jnp
from jax.experimental import pallas as pl
from jax.experimental.pallas import tpu as pltpu

# Deterministic "parameters": the fixed keypoint prediction from __init__.
_PREDICTION = jnp.array(
    [[0.4685, -0.2319, -0.4253, -0.1953, 0.2908, -0.2214, 0.5992, -0.2214,
      -0.2685, -0.2109, -0.5873, -0.19, 0.1967, -0.3827, 0.7656, -0.4295,
      -0.2035, -0.3758, -0.7389, -0.3573, 0.0086, 0.2333, 0.4163, 0.662,
      -0.3521, 0.6985, 0.0138, 0.6045, 0.019, 0.9076]],
    dtype=jnp.float32,
)  # shape (1, 30)

_K = 30                 # keypoint values per sample
_LANES = 128            # vreg lane width
_GROUP_BATCH = 64       # 64 samples * 30 floats = 1920 = 15 dense rows of 128
_GROUP_ROWS = 15
_PACK_TILE_ROWS_MAX = 4080   # multiple of lcm(8,15)=120; ~2 MiB f32 per block
_ROW_TILE_MAX = 512          # fallback (lane-sparse) path tile, multiple of 8
_FAST_PATH_BYTES = 32 * 1024  # below this, skip the kernel entirely


def _round_up(a: int, b: int) -> int:
    return ((a + b - 1) // b) * b


# ----------------------------- kernels ------------------------------------ #

def _packed_copy_kernel(pat_ref, out_ref):
    # pat_ref: (tile_rows, 128) lane-dense repetition of the 30-float
    #          prediction; constant index map -> stays VMEM-resident.
    # out_ref: (tile_rows, 128) output tile. Pure dense copy -> unmasked vst /
    #          dense writeback DMA.
    out_ref[...] = pat_ref[...]


def _row_broadcast_kernel(pred_ref, out_ref):
    # pred_ref: (1, 30) prediction row (VMEM-resident across the grid).
    # out_ref : (tn, 30) output tile (K=30 lane-sparse fallback layout).
    out_ref[...] = jnp.broadcast_to(pred_ref[...], out_ref.shape)


# --------------------------- kernel wrappers ------------------------------- #

def _forward_packed(n: int, prediction: jax.Array) -> jax.Array:
    """Lane-dense path; requires n % 64 == 0 so n*30 is a multiple of 128."""
    k = prediction.shape[-1]
    rows_total = (n // _GROUP_BATCH) * _GROUP_ROWS  # == n * 30 / 128 exactly

    if rows_total <= 240:
        # Tiny output (<=120 KiB): single full-array block, one grid step.
        tile_rows = rows_total
    else:
        # Aim for >= 2 grid steps (v7x: both TensorCores drive the writeback),
        # capped at ~2 MiB per block. Tile rows are a multiple of 120
        # (= lcm(8, 15)) so every block is 8-aligned and its contents are an
        # integer number of 30-float repeats (final partial block is masked
        # by Pallas -- no pad-then-slice in the wrapper).
        half = -(-rows_total // 2)
        tile_rows = min(_PACK_TILE_ROWS_MAX, _round_up(half, 120))
        tile_rows = min(tile_rows, rows_total)
    grid = (pl.cdiv(rows_total, tile_rows),)

    # Trace-time lane-dense pattern: the 30-float row tiled to fill one block.
    reps = (tile_rows * _LANES) // k
    pattern = jnp.tile(prediction.reshape(-1), reps).reshape(tile_rows, _LANES)

    out = pl.pallas_call(
        _packed_copy_kernel,
        out_shape=jax.ShapeDtypeStruct((rows_total, _LANES), prediction.dtype),
        grid=grid,
        # Pattern block pinned to (0, 0): VMEM-resident, no re-fetch.
        in_specs=[pl.BlockSpec((tile_rows, _LANES), lambda i: (0, 0))],
        out_specs=pl.BlockSpec((tile_rows, _LANES), lambda i: (i, 0)),
        compiler_params=pltpu.CompilerParams(
            dimension_semantics=("parallel",),
            vmem_limit_bytes=64 * 1024 * 1024,
        ),
        cost_estimate=pl.CostEstimate(
            flops=0, transcendentals=0,
            bytes_accessed=(rows_total + tile_rows) * _LANES * 4),
    )(pattern)

    # (rows_total, 128) and (n, 1, 1, 30) share the same row-major element
    # order, so this reshape is metadata-only (no extra HBM traffic).
    return out.reshape(n, 1, 1, k)


def _forward_rows(n: int, prediction: jax.Array) -> jax.Array:
    """Fallback (n, 30) layout for batch sizes not a multiple of 64."""
    k = prediction.shape[-1]
    tn = n if n <= _ROW_TILE_MAX else _ROW_TILE_MAX
    grid = (pl.cdiv(n, tn),)  # final partial block masked by Pallas

    out = pl.pallas_call(
        _row_broadcast_kernel,
        out_shape=jax.ShapeDtypeStruct((n, k), prediction.dtype),
        grid=grid,
        in_specs=[pl.BlockSpec((1, k), lambda i: (0, 0))],
        out_specs=pl.BlockSpec((tn, k), lambda i: (i, 0)),
        compiler_params=pltpu.CompilerParams(
            dimension_semantics=("parallel",),
        ),
        cost_estimate=pl.CostEstimate(
            flops=0, transcendentals=0, bytes_accessed=(n + 1) * k * 4),
    )(prediction)
    return out.reshape(n, 1, 1, k)


def dummy_keypoint_forward(x: jax.Array,
                           prediction: jax.Array = _PREDICTION,
                           *,
                           force_kernel: bool = False) -> jax.Array:
    """Equivalent of DummyKeypointModel.forward(x): returns (N, 1, 1, 30)."""
    n = x.shape[0]
    k = prediction.shape[-1]

    # Small-N fast path: a few hundred bytes of output is dominated by the
    # custom-call launch; a plain broadcast fuses into neighbouring XLA ops.
    if not force_kernel and n * k * 4 <= _FAST_PATH_BYTES:
        return jnp.broadcast_to(prediction.reshape(1, 1, 1, k), (n, 1, 1, k))

    if k == _K and n % _GROUP_BATCH == 0:
        return _forward_packed(n, prediction)
    # TODO(synk): a lane-dense layout for batch sizes not divisible by 64
    # would need a trailing remainder block; the row layout is kept for those.
    return _forward_rows(n, prediction)


if __name__ == "__main__":
    key = jax.random.PRNGKey(0)
    # Small NCHW input; only the batch size matters to this module.
    x = jax.random.normal(key, (2, 4, 16, 16), dtype=jnp.float32)

    def expected(n):
        return jnp.broadcast_to(_PREDICTION.reshape(1, 1, 1, _K), (n, 1, 1, _K))

    # 1) Default path for realistic small batches (fused broadcast, no kernel).
    y_fast = jax.block_until_ready(dummy_keypoint_forward(x))
    assert y_fast.shape == (2, 1, 1, 30), y_fast.shape
    assert jnp.allclose(y_fast, expected(2)), "fast path mismatch"

    # 2) Row-layout Pallas kernel (batch not a multiple of 64).
    y_rows = jax.block_until_ready(dummy_keypoint_forward(x, force_kernel=True))
    assert y_rows.shape == (2, 1, 1, 30), y_rows.shape
    assert jnp.allclose(y_rows, expected(2)), "row-kernel mismatch"

    # 3) Lane-dense packed Pallas kernel (batch a multiple of 64).
    x_big = jax.random.normal(jax.random.PRNGKey(0), (128, 1, 4, 4),
                              dtype=jnp.float32)
    y_pack = jax.block_until_ready(
        dummy_keypoint_forward(x_big, force_kernel=True))
    assert y_pack.shape == (128, 1, 1, 30), y_pack.shape
    assert jnp.allclose(y_pack, expected(128)), "packed-kernel mismatch"

    print("KERNEL_OK")
</pallas_src>

<mosaic_0001>
module attributes {stable_mosaic.version = 11 : i64} {
  func.func @_row_broadcast_kernel(%arg0: i32, %arg1: memref<1x30xf32, #tpu.memory_space<vmem>>, %arg2: memref<2x30xf32, #tpu.memory_space<vmem>>) attributes {dimension_semantics = [#tpu.dimension_semantics<parallel>], iteration_bounds = array<i64: 1>, scalar_prefetch = 0 : i64, scratch_operands = 0 : i64, tpu.core_type = #tpu.core_type<tc>, window_params = [{pipeline_mode = #tpu.pipeline_mode<synchronous>, transform_indices = @transform_0, window_bounds = array<i64: 1, 30>}, {transform_indices = @transform_1, window_bounds = array<i64: 2, 30>}]} {
    %c0 = arith.constant 0 : index
    %c0_0 = arith.constant 0 : index
    %0 = vector.load %arg1[%c0, %c0_0] : memref<1x30xf32, #tpu.memory_space<vmem>>, vector<1x30xf32>
    %1 = vector.shape_cast %0 : vector<1x30xf32> to vector<1x30xf32>
    %2 = vector.broadcast %1 : vector<1x30xf32> to vector<2x30xf32>
    %c0_1 = arith.constant 0 : index
    %c0_2 = arith.constant 0 : index
    %3 = vector.load %arg2[%c0_1, %c0_2] : memref<2x30xf32, #tpu.memory_space<vmem>>, vector<2x30xf32>
    tpu.vector_store %arg2[%c0_1, %c0_2], %2 {strides = array<i32>} : memref<2x30xf32, #tpu.memory_space<vmem>>, vector<2x30xf32>,
    return
  }
  func.func @transform_0(%arg0: i32) -> (i32, i32) {
    %c0_i32 = arith.constant 0 : i32
    %c0_i32_0 = arith.constant 0 : i32
    %c0_i32_1 = arith.constant 0 : i32
    return %c0_i32, %c0_i32_0 : i32, i32
  }
  func.func @transform_1(%arg0: i32) -> (i32, i32) {
    %c0_i32 = arith.constant 0 : i32
    %c0_i32_0 = arith.constant 0 : i32
    return %arg0, %c0_i32 : i32, i32
  }
}

</mosaic_0001>

<bundles_post_ra>
// kernel: tpu_custom_call.1
= control target key start
LH: loop header
LB: loop body
LE: loop exit
PB: predicated region body
PF: predicated region fallthrough
CT: control target
= control target key end

     0   :  { %6 = vsyncpa [#allocation3], 0  ;;  %s110_s0 = inlined_call_operand.hbm [shape: f32[1,30], index: 0, kind: input, shape index: {}]   ;;  %s111_s1 = inlined_call_operand.hbm [shape: f32[2,30], index: 1, kind: output, shape index: {}]  }
   0x1   :  { %7 = vsyncpa [#allocation4], 0  ;;  %s92_s6 = smov [#allocation2]  }
   0x2   :  { %s14_s7 = sshll.u32 %s92_s6, 4  ;;  %s15_s7 = int_to_ptr.vmem [resolvable:$true] %s14_s7 }
   0x3   :  { %s56_s8 = scalar_lea.vmem %s15_s7, 16  ;;  %s60_s9 = scalar_lea.vmem %s15_s7, 32 }
   0x4   :  { %p57_p0 = scmp.ne.s32.totalorder %s15_s7, %s56_s8  ;;  %p61_p1 = scmp.lt.s32.totalorder %s15_s7, %s15_s7 }
   0x5   :  { %p62_p2 = scmp.lt.s32.totalorder %s60_s9, %s56_s8 }
   0x7   :  { %p63_p3 = por %p62_p2, %p61_p1 }
   0x9   :  { %p64_p4 = pnand %p63_p3, %p57_p0 }
   0xb   :  { %67 = shalt.err (!%p64_p4)
}
   0xc   :  { %17 = dma.hbm_to_vmem [thread:$0]  %s110_s0, 16, %s15_s7, [#allocation3]  }
   0xd   :  { %88 = dma.done.wait [#allocation3], 16  }
   0xe   :  { %89 = vsyncadd [#allocation3], 4294967280  ;;  %s93_s12 = smov [#allocation5]   ;;  %vm28_vm0 = vcmask 238592   ;;  %v45_v0 = vld [vmem:[#allocation2] ss:$0 sm:$0xff] }
   0xf   :  { %s36_s13 = sshll.u32 %s93_s12, 4  ;;  %29 = vst.msk [vmem:[#allocation5] sm:$0x3] %vm28_vm0, %v45_v0  ;;  %s37_s13 = int_to_ptr.vmem [resolvable:$true] %s36_s13 }
  0x10   :  { %s68_s14 = scalar_lea.vmem %s37_s13, 32  ;;  %p73_p6 = scmp.lt.s32.totalorder %s37_s13, %s37_s13 }
  0x11   :  { %p69_p5 = scmp.ne.s32.totalorder %s37_s13, %s68_s14  ;;  %p74_p7 = scmp.lt.s32.totalorder %s68_s14, %s68_s14 }
  0x13   :  { %p75_p8 = por %p74_p7, %p73_p6 }
  0x15   :  { %p76_p9 = pnand %p75_p8, %p69_p5 }
  0x17   :  { %79 = shalt.err (!%p76_p9)
}
  0x18   :  { %39 = dma.vmem_to_hbm [thread:$0]  %s37_s13, 32, %s111_s1, [#allocation4]  }
  0x19   :  { %90 = dma.done.wait [#allocation4], 32  }
  0x1a   :  { %91 = vsyncadd [#allocation4], 4294967264 }
  0x1b   :  { %43 = vsyncpa [#allocation3], 1 }
  0x1c   :  { %44 = vsyncpa [#allocation4], 1 }

</bundles_post_ra>
